<compile_context>
chip_gen: v5e
topology: v5e:2x2
jax: 0.10.0
libtpu: 0.0.40
codegen_flags: <defaults>
</compile_context>

<pallas_src>
import functools
import math

import jax
import jax.numpy as jnp
from jax.experimental import pallas as pl
from jax.experimental.pallas import tpu as pltpu


def _cdiv(a: int, b: int) -> int:
    return -(-a // b)


def _round_up(a: int, m: int) -> int:
    return _cdiv(a, m) * m


def _step_embedding_kernel(x_ref, out_ref, *, half_dim: int, embedding_dim: int,
                           group: int, neg_scale: float):
    # x_ref:   [TR, group]            (VMEM)
    # out_ref: [TR, group*emb]        (VMEM), row r lanes = [emb(x[r,0]),...,emb(x[r,g-1])]
    width = group * embedding_dim

    # Per-lane constants: one (1, width) vector, rebuilt per grid step (negligible).
    lane = jax.lax.broadcasted_iota(jnp.int32, (1, width), 1)
    if group == 1:
        chan = lane                                   # channel index within the embedding
    else:
        chan = lane & (embedding_dim - 1)             # emb divides 128 -> power of two
    freq = jnp.where(chan < half_dim, chan, chan - half_dim).astype(jnp.float32)
    div_full = jnp.exp(freq * jnp.float32(neg_scale))                         # [1, width]
    # cos(t) = sin(t + pi/2): one transcendental pass over the whole tile, no concat.
    phase = jnp.where(chan < half_dim, jnp.float32(0.0), jnp.float32(math.pi / 2.0))

    if group == 1:
        x_wide = x_ref[...]                           # [TR, 1] -> broadcast across lanes
    else:
        # Expand x from `group` lanes to `width` lanes: x_wide[r, p] = x[r, p // emb].
        # 0/1 selection matmul: uses the otherwise-idle MXU instead of VPU passes;
        # exact (one nonzero per output column) at HIGHEST precision.
        emb_log2 = embedding_dim.bit_length() - 1
        grp_of_lane = jnp.right_shift(lane, emb_log2)                         # [1, width]
        grp_row = jax.lax.broadcasted_iota(jnp.int32, (group, width), 0)
        select = (grp_row == grp_of_lane).astype(jnp.float32)                 # [group, width]
        x_wide = jnp.dot(x_ref[...], select,
                         precision=jax.lax.Precision.HIGHEST,
                         preferred_element_type=jnp.float32)                  # [TR, width]

    # Single lane-dense full-block store.
    out_ref[...] = jnp.sin(x_wide * div_full + phase)


def step_embedding(x: jax.Array, embedding_dim: int, *,
                   target_block_bytes: int = 4 * 1024 * 1024) -> jax.Array:
    """x: [B] float -> [B, embedding_dim] float32 sinusoidal step embedding."""
    assert embedding_dim % 2 == 0
    # embedding_dim == 2 divides by zero (half_dim - 1) in the reference module too.
    assert embedding_dim >= 4, "embedding_dim must be >= 4 (half_dim - 1 divisor)"
    half_dim = embedding_dim // 2
    neg_scale = -(math.log(10000.0) / (half_dim - 1))

    (B,) = x.shape

    # Lane packing: `group` batch elements per kernel row -> output row width is a
    # dense multiple of 128 lanes when embedding_dim divides 128.
    if embedding_dim < 128 and 128 % embedding_dim == 0:
        group = 128 // embedding_dim
    else:
        group = 1
    width = group * embedding_dim
    rows = _cdiv(B, group)                 # packed rows of real data

    # Row tile targeting ~target_block_bytes of output per grid step, sublane aligned.
    tr_cap = max(8, (target_block_bytes // (width * 4)) // 8 * 8)
    num_blocks = _cdiv(rows, tr_cap)
    # v7x: the "parallel" grid axis only feeds both TensorCores if there are >= 2 blocks.
    if num_blocks < 2 and rows >= 2 * 256:
        num_blocks = 2
    # Balanced tiles: padding bounded by < 8 * num_blocks rows (vs. up to a full tile).
    tile_rows = max(8, _round_up(_cdiv(rows, num_blocks), 8))
    num_blocks = _cdiv(rows, tile_rows)
    rows_padded = num_blocks * tile_rows
    b_padded = rows_padded * group

    x_flat = x.astype(jnp.float32)
    if b_padded != B:
        x_flat = jnp.pad(x_flat, (0, b_padded - B))
    x_packed = x_flat.reshape(rows_padded, group)

    kernel = functools.partial(
        _step_embedding_kernel,
        half_dim=half_dim, embedding_dim=embedding_dim,
        group=group, neg_scale=neg_scale)

    out_packed = pl.pallas_call(
        kernel,
        out_shape=jax.ShapeDtypeStruct((rows_padded, width), jnp.float32),
        grid=(num_blocks,),
        in_specs=[pl.BlockSpec((tile_rows, group), lambda i: (i, 0))],
        out_specs=pl.BlockSpec((tile_rows, width), lambda i: (i, 0)),
        compiler_params=pltpu.CompilerParams(
            dimension_semantics=("parallel",),        # shards row tiles across v7x TCs
            vmem_limit_bytes=32 * 1024 * 1024,        # ~16 MiB worst-case usage; covers v5e
        ),
    )(x_packed)

    out = out_packed.reshape(b_padded, embedding_dim)   # free row-major reshape (unpack)
    if b_padded != B:
        out = out[:B]
    return out


def _reference(x: jax.Array, embedding_dim: int) -> jax.Array:
    half_dim = embedding_dim // 2
    div_term = jnp.exp(
        jnp.arange(half_dim, dtype=jnp.float32) * -(math.log(10000.0) / (half_dim - 1))
    )
    arg = x.astype(jnp.float32)[:, None] * div_term[None, :]
    return jnp.concatenate([jnp.sin(arg), jnp.cos(arg)], axis=1)


if __name__ == "__main__":
    # NOTE on tolerance: cos is computed as sin(t + pi/2); f32 rounding of (t + pi/2)
    # and f32 range reduction give |err| ~ |t| * eps ~ 1e-4 for timesteps up to 1000,
    # so we compare with atol=1e-3 (structural bugs would show up as O(1) errors).
    TOL = 1e-3

    # Primary: small, diffusion-style shapes (B=8 timesteps, embedding_dim=32).
    B, emb = 8, 32
    x = jax.random.uniform(jax.random.PRNGKey(0), (B,), jnp.float32, 0.0, 1000.0)
    out = step_embedding(x, emb)
    jax.block_until_ready(out)
    assert out.shape == (B, emb)
    assert jnp.allclose(out, _reference(x, emb), atol=TOL), "mismatch vs reference (packed)"

    # Multi-block grid + padding + lane-packing path (tiny blocks to exercise the grid).
    B2 = 1030
    x2 = jax.random.uniform(jax.random.PRNGKey(1), (B2,), jnp.float32, 0.0, 1000.0)
    out2 = step_embedding(x2, emb, target_block_bytes=16 * 1024)
    jax.block_until_ready(out2)
    assert out2.shape == (B2, emb)
    assert jnp.allclose(out2, _reference(x2, emb), atol=TOL), "mismatch (multi-block)"

    # Unpacked path (embedding_dim >= 128, group == 1).
    B3, emb3 = 16, 128
    x3 = jax.random.uniform(jax.random.PRNGKey(2), (B3,), jnp.float32, 0.0, 1000.0)
    out3 = step_embedding(x3, emb3)
    jax.block_until_ready(out3)
    assert jnp.allclose(out3, _reference(x3, emb3), atol=TOL), "mismatch (emb=128)"

    # Fallback path: embedding_dim does not divide 128 (group == 1, narrow store).
    B4, emb4 = 8, 48
    x4 = jax.random.uniform(jax.random.PRNGKey(3), (B4,), jnp.float32, 0.0, 1000.0)
    out4 = step_embedding(x4, emb4)
    jax.block_until_ready(out4)
    assert jnp.allclose(out4, _reference(x4, emb4), atol=TOL), "mismatch (emb=48)"

    print("KERNEL_OK")
</pallas_src>

<mosaic_0001>
module attributes {stable_mosaic.version = 11 : i64} {
  func.func @_step_embedding_kernel(%arg0: i32, %arg1: memref<8x4xf32, #tpu.memory_space<vmem>>, %arg2: memref<8x128xf32, #tpu.memory_space<vmem>>) attributes {dimension_semantics = [#tpu.dimension_semantics<parallel>], iteration_bounds = array<i64: 1>, scalar_prefetch = 0 : i64, scratch_operands = 0 : i64, tpu.core_type = #tpu.core_type<tc>, window_params = [{transform_indices = @transform_0, window_bounds = array<i64: 8, 4>}, {transform_indices = @transform_1, window_bounds = array<i64: 8, 128>}]} {
    %0 = tpu.iota {dimensions = array<i32: 1>} : vector<1x128xi32>
    %c31_i32 = arith.constant 31 : i32
    %1 = vector.broadcast %c31_i32 : i32 to vector<1x128xi32>
    %2 = arith.andi %0, %1 : vector<1x128xi32>
    %c16_i32 = arith.constant 16 : i32
    %3 = vector.broadcast %c16_i32 : i32 to vector<1x128xi32>
    %4 = arith.cmpi slt, %2, %3 : vector<1x128xi32>
    %c16_i32_0 = arith.constant 16 : i32
    %5 = vector.broadcast %c16_i32_0 : i32 to vector<1x128xi32>
    %6 = arith.subi %2, %5 : vector<1x128xi32>
    %7 = arith.select %4, %2, %6 : vector<1x128xi1>, vector<1x128xi32>
    %8 = arith.sitofp %7 : vector<1x128xi32> to vector<1x128xf32>
    %cst = arith.constant -0.614022672 : f32
    %9 = vector.broadcast %cst : f32 to vector<1x128xf32>
    %10 = arith.mulf %8, %9 : vector<1x128xf32>
    %11 = math.exp %10 : vector<1x128xf32>
    %c16_i32_1 = arith.constant 16 : i32
    %12 = vector.broadcast %c16_i32_1 : i32 to vector<1x128xi32>
    %13 = arith.cmpi slt, %2, %12 : vector<1x128xi32>
    %cst_2 = arith.constant 0.000000e+00 : f32
    %cst_3 = arith.constant 1.57079637 : f32
    %14 = vector.broadcast %cst_2 : f32 to vector<1x128xf32>
    %15 = vector.broadcast %cst_3 : f32 to vector<1x128xf32>
    %16 = arith.select %13, %14, %15 : vector<1x128xi1>, vector<1x128xf32>
    %c5_i32 = arith.constant 5 : i32
    %17 = vector.broadcast %c5_i32 : i32 to vector<1x128xi32>
    %18 = arith.shrsi %0, %17 : vector<1x128xi32>
    %19 = tpu.iota {dimensions = array<i32: 0>} : vector<4x128xi32>
    %20 = vector.broadcast %18 : vector<1x128xi32> to vector<4x128xi32>
    %21 = arith.cmpi eq, %19, %20 : vector<4x128xi32>
    %22 = arith.extui %21 : vector<4x128xi1> to vector<4x128xi32>
    %23 = arith.sitofp %22 : vector<4x128xi32> to vector<4x128xf32>
    %c0 = arith.constant 0 : index
    %c0_4 = arith.constant 0 : index
    %24 = vector.load %arg1[%c0, %c0_4] : memref<8x4xf32, #tpu.memory_space<vmem>>, vector<8x4xf32>
    %cst_5 = arith.constant dense<0.000000e+00> : vector<8x128xf32>
    %25 = tpu.matmul %24, %23, %cst_5 {dimension_numbers = #tpu.dot_dimension_numbers<[1], [0], [0], [1], [0, 0, 1, 1], [], []>, precision = #tpu.contract_precision<fp32>} : vector<8x4xf32>, vector<4x128xf32>, vector<8x128xf32> -> vector<8x128xf32>
    %26 = vector.broadcast %11 : vector<1x128xf32> to vector<8x128xf32>
    %27 = arith.mulf %25, %26 : vector<8x128xf32>
    %28 = vector.broadcast %16 : vector<1x128xf32> to vector<8x128xf32>
    %29 = arith.addf %27, %28 : vector<8x128xf32>
    %30 = math.sin %29 : vector<8x128xf32>
    %c0_6 = arith.constant 0 : index
    %c0_7 = arith.constant 0 : index
    %31 = vector.load %arg2[%c0_6, %c0_7] : memref<8x128xf32, #tpu.memory_space<vmem>>, vector<8x128xf32>
    tpu.vector_store %arg2[%c0_6, %c0_7], %30 {strides = array<i32>} : memref<8x128xf32, #tpu.memory_space<vmem>>, vector<8x128xf32>,
    return
  }
  func.func @transform_0(%arg0: i32) -> (i32, i32) {
    %c0_i32 = arith.constant 0 : i32
    %c0_i32_0 = arith.constant 0 : i32
    return %arg0, %c0_i32 : i32, i32
  }
  func.func @transform_1(%arg0: i32) -> (i32, i32) {
    %c0_i32 = arith.constant 0 : i32
    %c0_i32_0 = arith.constant 0 : i32
    return %arg0, %c0_i32 : i32, i32
  }
}

</mosaic_0001>

<bundles_post_ra>
// kernel: tpu_custom_call.1
= control target key start
LH: loop header
LB: loop body
LE: loop exit
PB: predicated region body
PF: predicated region fallthrough
CT: control target
= control target key end

     0   :  { %v9_v0 = vlaneseq  ;;  %vm27_vm0 = vcmask 31744   ;;  %s487_s0 = inlined_call_operand.vmem [shape: f32[8,4], index: 0, kind: input, shape index: {}]   ;;  %s488_s1 = inlined_call_operand.hbm [shape: f32[8,128], index: 1, kind: output, shape index: {}]  }
   0x1   :  { %v26_v1 = vld [vmem:[%s487_s0] sm:$0xff] }
   0x2   :  { %6 = vsyncpa [#allocation3], 0  ;;  %v29_v2 = vsel %vm27_vm0, %v26_v1, 0  ;;  %v10_v3 = vand.u32 127, %v9_v0  ;;  %v22_v4 = vshrl.u32 %v9_v0, 7  ;;  %vm31_vm1 = vcmask 1043456  }
   0x3   :  { %v52_v5 = vand.u32 4294901760, %v29_v2  ;;  %v401_v9 = vmov 0.0   ;;  %v402_v36 = vmov 1.5707964   ;;  %v403_v51 = vmov 2102212464  }
   0x4   :  { %v20_v6 = vshra.s32 %v10_v3, 5  ;;  %v11_v18 = vand.u32 31, %v10_v3  ;;  %v404_v53 = vmov 920167782   ;;  %v405_v56 = vmov 1326507024  }
   0x5   :  { %v53_v7 = vsub.f32 %v29_v2, %v52_v5  ;;  %v406_v58 = vmov 683565275   ;;  %v407_v60 = vmov 2475754826   ;;  %v408_v63 = vmov 2131351028  }
   0x6   :  { %vm23_vm2 = vcmp.eq.s32.totalorder %v22_v4, %v20_v6  ;;  %v355_v19 = vadd.s32 4294967280, %v11_v18  ;;  %vm12_vm3 = vcmp.lt.s32.totalorder %v11_v18, 16  ;;  %s410_s0 = smov [#allocation2]   ;;  %s346_s11 = sshll.u32 %s488_s1, 4  ;;  %s347_s11 = int_to_ptr.hbm [resolvable:$true] %s346_s11 }
   0x7   :  { %v54_v8 = vand.u32 4294901760, %v53_v7  ;;  %v356_v10 = vsel %vm23_vm2, 1.0, %v401_v9  ;;  %v19_v37 = vsel %vm12_vm3, 0.0, %v402_v36  ;;  %s344_s8 = sshll.u32 %s410_s0, 4  ;;  %s345_s8 = int_to_ptr.vmem [resolvable:$true] %s344_s8 }
   0x8   :  { %v33_v11 = vsel %vm31_vm1, %v356_v10, 0  ;;  %357 = vmatpush.msk.msra.mxu0 %vm31_vm1, %v356_v10  ;;  %358 = vmatpush.msk.msra.mxu3 %vm31_vm1, %v356_v10  ;;  %v14_v20 = vsel %vm12_vm3, %v11_v18, %v355_v19 }
   0x9   :  { %v55_v12 = vsub.f32 %v53_v7, %v54_v8  ;;  %v77_v13 = vsub.f32 %v33_v11, %v33_v11  ;;  %131 = vmatmul.f32.vlgmr.msra.gmra.mxu3 %v54_v8  ;;  %v15_v21 = vcvt.s32.f32 %v14_v20 }
   0xb   :  { %v56_v14 = vand.u32 4294901760, %v55_v12  ;;  %104 = vmatpush.msra.mxu2 %v77_v13  ;;  %v78_v15 = vand.u32 4294901760, %v77_v13  ;;  %v16_v23 = vmul.f32 -0.6140227, %v15_v21 }
   0xc   :  { %107 = vmatmul.f32.vlgmr.msra.gmra.mxu2 %v53_v7 }
   0xd   :  { %57 = vmatmul.f32.vlgmr.msra.gmra.mxu0 %v56_v14  ;;  %v79_v16 = vsub.f32 %v77_v13, %v78_v15  ;;  %v17_v24 = vmul.f32 1.442695, %v16_v23 }
   0xe   :  { %153 = vmatpush.msrb.mxu0 %v78_v15 }
   0xf   :  { %v80_v17 = vand.u32 4294901760, %v79_v16  ;;  %373 = vpow2.f32 %v17_v24 }
  0x11   :  { %81 = vmatpush.msra.mxu1 %v80_v17 }
  0x12   :  { %83 = vmatmul.f32.vlgmr.msra.gmra.mxu1 %v52_v5 }
  0x13   :  { %359 = vmatpush.msk.msrb.mxu1 %vm31_vm1, %v356_v10 }
  0x15   :  { %155 = vmatmul.f32.vlgmr.msrb.gmra.mxu0 %v52_v5  ;;  %v374_v33 = vpop.eup %373 }
  0x1a   :  { %177 = vmatmul.f32.vlgmr.msrb.gmra.mxu1 %v52_v5 }
  0x8a   :  { %v58_v22 = vpop.f32.mrf.mxu0 }
  0x8c   :  { %v132_v28 = vpop.f32.mrf.mxu3 }
  0x8f   :  { %v84_v25 = vpop.f32.mrf.mxu1  ;;  %v108_v26 = vpop.f32.mrf.mxu2 }
  0x90   :  { %v85_v27 = vadd.f32 %v84_v25, %v58_v22 }
  0x92   :  { %v109_v29 = vadd.f32 %v108_v26, %v85_v27  ;;  %v156_v30 = vpop.f32.mrf.mxu0 }
  0x94   :  { %v133_v31 = vadd.f32 %v132_v28, %v109_v29 }
  0x96   :  { %v157_v32 = vadd.f32 %v156_v30, %v133_v31 }
  0x97   :  { %v178_v34 = vpop.f32.mrf.mxu1 }
  0x98   :  { %v179_v35 = vadd.f32 %v178_v34, %v157_v32 }
  0x9a   :  { %v181_v38 = vmul.f32 %v374_v33, %v179_v35 }
  0x9c   :  { %v430_v39 = vadd.f32 %v181_v38, %v19_v37  ;;  %v409_v37 = vmov 0  }
  0x9e   :  { %v186_v40 = vand.u32 2139095040, %v430_v39  ;;  %v183_v43 = vand.u32 2147483647, %v430_v39  ;;  %vm185_vm0 = vcmp.lt.s32.totalorder %v430_v39, 0 }
  0xa0   :  { %v187_v41 = vshrl.u32 %v186_v40, 23  ;;  %v190_v45 = vand.u32 8388607, %v183_v43  ;;  %vm184_vm1 = vcmp.le.f32.partialorder %v183_v43, 0.7853982 }
  0xa2   :  { %v360_v42 = vadd.s32 4294967169, %v187_v41  ;;  %v191_v49 = vor.u32 8388608, %v190_v45 }
  0xa4   :  { %v193_v44 = vadd.s32 1, %v360_v42  ;;  %v445_v6 = vshll.u32 %v191_v49, 8 }
  0xa6   :  { %vm194_vm4 = vcmp.gt.s32.totalorder %v193_v44, 0  ;;  %v232_v16 = vand.u32 65535, %v445_v6  ;;  %v233_v18 = vshrl.u32 %v445_v6, 16 }
  0xa7   :  { %v195_v46 = vsel %vm194_vm4, %v193_v44, 0 }
  0xa8   :  { %v197_v47 = vand.u32 31, %v195_v46  ;;  %v438_v50 = vshrl.u32 %v195_v46, 5 }
  0xaa   :  { %v436_v48 = vsub.s32 32, %v197_v47  ;;  %v209_v52 = vshll.u32 %v403_v51, %v197_v47  ;;  %v212_v54 = vshll.u32 %v404_v53, %v197_v47  ;;  %v200_v59 = vshll.u32 %v406_v58, %v197_v47 }
  0xab   :  { %v203_v62 = vshll.u32 %v407_v60, %v197_v47  ;;  %v206_v1 = vshll.u32 %v408_v63, %v197_v47  ;;  %vm218_vm5 = vcmp.lt.s32.totalorder %v438_v50, 4  ;;  %vm215_vm6 = vcmp.lt.s32.totalorder %v438_v50, 1 }
  0xac   :  { %v210_v55 = vshrl.u32 %v404_v53, %v436_v48  ;;  %v213_v57 = vshrl.u32 %v405_v56, %v436_v48  ;;  %v201_v61 = vshrl.u32 %v407_v60, %v436_v48  ;;  %v204_v0 = vshrl.u32 %v408_v63, %v436_v48 }
  0xad   :  { %v207_v2 = vshrl.u32 %v403_v51, %v436_v48  ;;  %vm217_vm7 = vcmp.lt.s32.totalorder %v438_v50, 3  ;;  %vm216_vm8 = vcmp.lt.s32.totalorder %v438_v50, 2  ;;  %v199_v44 = vshrl.u32 %v406_v58, %v436_v48 }
  0xae   :  { %v211_v3 = vor.u32 %v210_v55, %v209_v52  ;;  %v214_v4 = vor.u32 %v213_v57, %v212_v54  ;;  %v202_v5 = vor.u32 %v201_v61, %v200_v59  ;;  %v205_v7 = vor.u32 %v204_v0, %v203_v62 }
  0xaf   :  { %v208_v8 = vor.u32 %v207_v2, %v206_v1 }
  0xb0   :  { %v224_v9 = vsel %vm218_vm5, %v211_v3, 920167782  ;;  %v228_v10 = vsel %vm218_vm5, %v214_v4, 1326507024  ;;  %v223_v11 = vsel %vm215_vm6, %v202_v5, %v205_v7  ;;  %v219_v52 = vsel %vm215_vm6, %v199_v44, %v202_v5 }
  0xb1   :  { %v225_v12 = vsel %vm217_vm7, %v208_v8, %v224_v9  ;;  %v227_v13 = vsel %vm215_vm6, %v205_v7, %v208_v8  ;;  %v229_v15 = vsel %vm217_vm7, %v211_v3, %v228_v10  ;;  %v220_v40 = vsel %vm218_vm5, %v208_v8, 2102212464 }
  0xb2   :  { %v226_v14 = vsel %vm216_vm8, %v223_v11, %v225_v12  ;;  %v230_v17 = vsel %vm216_vm8, %v227_v13, %v229_v15  ;;  %v221_v53 = vsel %vm217_vm7, %v205_v7, %v220_v40  ;;  %vm326_vm5 = vweird.f32 %v430_v39 }
  0xb3   :  { %v256_v19 = vand.u32 65535, %v226_v14  ;;  %v257_v20 = vshrl.u32 %v226_v14, 16  ;;  %v234_v21 = vand.u32 65535, %v230_v17  ;;  %v235_v22 = vshrl.u32 %v230_v17, 16 }
  0xb4   :  { %v222_v48 = vsel %vm216_vm8, %v219_v52, %v221_v53 }
  0xb5   :  { %v259_v23 = vmul.u32 %v257_v20, %v232_v16  ;;  %v260_v24 = vmul.u32 %v256_v19, %v233_v18  ;;  %v237_v25 = vmul.u32 %v235_v22, %v232_v16  ;;  %v238_v26 = vmul.u32 %v234_v21, %v233_v18 }
  0xb6   :  { %v258_v27 = vmul.u32 %v256_v19, %v232_v16  ;;  %v236_v29 = vmul.u32 %v234_v21, %v232_v16  ;;  %v261_v31 = vmul.u32 %v257_v20, %v233_v18  ;;  %v239_v32 = vmul.u32 %v235_v22, %v233_v18 }
  0xb7   :  { %v262_v28 = vshll.u32 %v259_v23, 16  ;;  %v240_v30 = vshll.u32 %v237_v25, 16  ;;  %v264_v33 = vshll.u32 %v260_v24, 16  ;;  %v242_v35 = vshll.u32 %v238_v26, 16 }
  0xb8   :  { %v263_v49 = vshrl.u32 %v259_v23, 16  ;;  %v241_v54 = vshrl.u32 %v237_v25, 16  ;;  %v265_v56 = vshrl.u32 %v260_v24, 16  ;;  %v243_v59 = vshrl.u32 %v238_v26, 16 }
  0xb9   :  { %vm266_vm9 = vc.u32 %v258_v27, %v262_v28  ;;  %v268_v34 = vadd.s32 %v262_v28, %v258_v27  ;;  %vm244_vm10 = vc.u32 %v236_v29, %v240_v30  ;;  %v246_v36 = vadd.s32 %v240_v30, %v236_v29 }
  0xba   :  { %v267_v38 = vsel %vm266_vm9, 1, %v409_v37  ;;  %v245_v41 = vsel %vm244_vm10, 1, %v409_v37  ;;  %v276_v0 = vmul.u32 %v445_v6, %v222_v48 }
  0xbb   :  { %v269_v42 = vadd.s32 %v267_v38, %v261_v31  ;;  %vm270_vm11 = vc.u32 %v268_v34, %v264_v33  ;;  %v247_v45 = vadd.s32 %v245_v41, %v239_v32  ;;  %vm248_vm12 = vc.u32 %v246_v36, %v242_v35 }
  0xbc   :  { %v271_v46 = vsel %vm270_vm11, 1, %v409_v37  ;;  %v249_v47 = vsel %vm248_vm12, 1, %v409_v37  ;;  %v272_v62 = vadd.s32 %v268_v34, %v264_v33 }
  0xbd   :  { %v273_v51 = vadd.s32 %v271_v46, %v269_v42  ;;  %v251_v55 = vadd.s32 %v249_v47, %v247_v45 }
  0xbf   :  { %v274_v57 = vadd.s32 %v273_v51, %v263_v49  ;;  %v252_v60 = vadd.s32 %v251_v55, %v241_v54 }
  0xc1   :  { %v275_v58 = vadd.s32 %v274_v57, %v265_v56  ;;  %v253_v61 = vadd.s32 %v252_v60, %v243_v59 }
  0xc3   :  { %v279_v63 = vadd.s32 1, %v275_v58  ;;  %vm278_vm13 = vc.u32 %v253_v61, %v272_v62  ;;  %v277_v12 = vadd.s32 %v272_v62, %v253_v61 }
  0xc5   :  { %v280_v1 = vsel %vm278_vm13, %v279_v63, %v275_v58 }
  0xc6   :  { %v281_v2 = vadd.s32 %v280_v1, %v276_v0 }
  0xc8   :  { %v282_v3 = vadd.s32 536870912, %v281_v2 }
  0xca   :  { %v283_v4 = vshrl.u32 %v282_v3, 30 }
  0xcc   :  { %v284_v5 = vshll.u32 %v283_v4, 30  ;;  %v307_v25 = vsub.s32 4, %v283_v4 }
  0xce   :  { %v285_v7 = vsub.s32 %v281_v2, %v284_v5  ;;  %v308_v30 = vsel %vm185_vm0, %v307_v25, %v283_v4 }
  0xcf   :  { %v310_v33 = vsel %vm184_vm1, 0, %v308_v30 }
  0xd0   :  { %vm286_vm14 = vcmp.lt.s32.totalorder %v285_v7, 0  ;;  %v287_v8 = vsub.s32 0, %v285_v7  ;;  %v327_v38 = vadd.s32 3, %v310_v33 }
  0xd2   :  { %v288_v9 = vsel %vm286_vm14, %v287_v8, %v285_v7  ;;  %v328_v44 = vand.u32 3, %v327_v38 }
  0xd3   :  { %v289_v10 = vclz %v288_v9 }
  0xd4   :  { %vm330_vm2 = vcmp.eq.s32.totalorder %v328_v44, 0  ;;  %vm333_vm3 = vcmp.eq.s32.totalorder %v328_v44, 2  ;;  %vm329_vm4 = vcmp.lt.s32.totalorder %v328_v44, 2 }
  0xd5   :  { %v361_v11 = vadd.s32 4294967294, %v289_v10 }
  0xd7   :  { %vm362_vm15 = vcmp.lt.s32.totalorder %v361_v11, 0 }
  0xd8   :  { %v292_v50 = vsel %vm362_vm15, 0, %v361_v11 }
  0xd9   :  { %v293_v13 = vsub.s32 32, %v292_v50  ;;  %v297_v14 = vsub.s32 4294967266, %v292_v50  ;;  %v294_v15 = vshll.u32 %v285_v7, %v292_v50 }
  0xdb   :  { %v295_v16 = vshrl.u32 %v277_v12, %v293_v13  ;;  %v298_v6 = vadd.s32 127, %v297_v14 }
  0xdd   :  { %v296_v17 = vor.u32 %v295_v16, %v294_v15  ;;  %v299_v18 = vshll.u32 %v298_v6, 23 }
  0xdf   :  { %v300_v19 = vor.u32 4788187, %v299_v18  ;;  %v303_v21 = vcvt.s32.f32 %v296_v17 }
  0xe1   :  { %v301_v20 = vand.u32 2147483647, %v300_v19 }
  0xe3   :  { %v304_v22 = vmul.f32 %v303_v21, %v301_v20 }
  0xe5   :  { %v305_v23 = vxor.u32 2147483648, %v304_v22 }
  0xe7   :  { %v306_v24 = vsel %vm185_vm0, %v305_v23, %v304_v22 }
  0xe8   :  { %v309_v26 = vsel %vm184_vm1, %v430_v39, %v306_v24 }
  0xe9   :  { %v311_v27 = vmul.f32 %v309_v26, %v309_v26 }
  0xeb   :  { %v312_v28 = vmul.f32 -0.001358992, %v311_v27  ;;  %v319_v29 = vmul.f32 -0.00019511016, %v311_v27 }
  0xed   :  { %v313_v31 = vadd.f32 0.041655596, %v312_v28  ;;  %v320_v32 = vadd.f32 0.008332121, %v319_v29 }
  0xef   :  { %v314_v34 = vmul.f32 %v313_v31, %v311_v27  ;;  %v321_v35 = vmul.f32 %v320_v32, %v311_v27 }
  0xf1   :  { %v315_v36 = vadd.f32 -0.4999988, %v314_v34  ;;  %v322_v37 = vadd.f32 -0.16666654, %v321_v35 }
  0xf3   :  { %v316_v40 = vmul.f32 %v315_v36, %v311_v27  ;;  %v323_v41 = vmul.f32 %v322_v37, %v311_v27 }
  0xf5   :  { %v317_v42 = vadd.f32 1.0, %v316_v40  ;;  %v324_v43 = vadd.f32 1.0, %v323_v41 }
  0xf7   :  { %v325_v45 = vmul.f32 %v324_v43, %v309_v26  ;;  %v334_v46 = vxor.u32 2147483648, %v317_v42 }
  0xf9   :  { %v331_v47 = vxor.u32 2147483648, %v325_v45  ;;  %v335_v51 = vsel %vm333_vm3, %v334_v46, %v325_v45 }
  0xfb   :  { %v332_v49 = vsel %vm330_vm2, %v317_v42, %v331_v47 }
  0xfc   :  { %v336_v52 = vsel %vm329_vm4, %v332_v49, %v335_v51 }
  0xfd   :  { %v337_v53 = vsel %vm326_vm5, nan, %v336_v52 }
  0xfe   :  { %338 = vst [vmem:[#allocation2] sm:$0xff] %v337_v53 }
  0xff   :  { %349 = dma.vmem_to_hbm [thread:$0]  %s345_s8, 128, %s347_s11, [#allocation3]  }
 0x100   :  { %399 = dma.done.wait [#allocation3], 128  }
 0x101   :  { %400 = vsyncadd [#allocation3], 4294967168 }
 0x102   :  { %354 = vsyncpa [#allocation3], 1 }

</bundles_post_ra>
